<compile_context>
chip_gen: v7x
topology: tpu7x:2x2x1
jax: 0.10.0
libtpu: 0.0.40
codegen_flags: <defaults>
</compile_context>

<pallas_src>
import functools

import jax
import jax.numpy as jnp
from jax import lax
from jax.experimental import pallas as pl
from jax.experimental.pallas import tpu as pltpu

_INV_SQRT2 = 0.7071067811865476


def _mlp_kernel(x_ref, w1_ref, b1_ref, w2_ref, b2_ref, o_ref, acc_ref):
    k = pl.program_id(1)

    @pl.when(k == 0)
    def _init():
        acc_ref[...] = jnp.zeros_like(acc_ref)

    # up-proj chunk: (tm, d_model) @ (d_model, th) -> f32 (tm, th) on the MXU.
    # No explicit upcast: bf16 operands go to the MXU natively.
    h = jnp.dot(x_ref[...], w1_ref[...], preferred_element_type=jnp.float32)
    h = h + b1_ref[...].astype(jnp.float32)            # (tm, th) + (1, th)

    # exact GELU (approximate='none'): 0.5 * x * (1 + erf(x / sqrt(2))), in f32.
    h = 0.5 * h * (1.0 + lax.erf(h * _INV_SQRT2))

    # down-proj chunk, accumulated in f32 VMEM scratch across hidden chunks.
    acc_ref[...] += jnp.dot(h.astype(w2_ref.dtype), w2_ref[...],
                            preferred_element_type=jnp.float32)

    @pl.when(k == pl.num_programs(1) - 1)
    def _finalize():
        # b2 is added exactly once, in the epilogue.
        o_ref[...] = (acc_ref[...] +
                      b2_ref[...].astype(jnp.float32)).astype(o_ref.dtype)


def _round_up(a, b):
    return (a + b - 1) // b * b


def _cdiv(a, b):
    return (a + b - 1) // b


def _vmem_capacity_bytes():
    """Physical VMEM of the current chip; conservative fallback if unknown."""
    try:
        return int(pltpu.get_tpu_info().vmem_capacity_bytes)
    except Exception:
        return 64 * 2**20      # conservative (v7x-sized) fallback


def _sublane(dtype):
    """Second-minor tiling multiple for a dtype (8 f32, 16 bf16, 32 i8/fp8)."""
    return max(8, 32 // jnp.dtype(dtype).itemsize)


def _pick_hidden_chunk(hidden, want, align=128):
    """Largest 128-aligned chunk <= want that evenly divides `hidden`.

    Falls back to the full hidden dim (a full-extent block is always legal)
    rather than an unaligned divisor that would violate the (8,128) rule.
    """
    if hidden <= align or hidden % align != 0:
        return hidden
    want = max(align, min(want, hidden))
    t = (want // align) * align
    while t >= align:
        if hidden % t == 0:
            return t
        t -= align
    return hidden


def _auto_hidden_chunk(hidden, d_model, w_itemsize, vmem_cap):
    """Budget-aware hidden chunk: double-buffered W1+W2 chunks fit ~40% VMEM."""
    budget = int(0.40 * vmem_cap)
    # double-buffered weight chunks: 2 * (d_model*th + th*d_model) * itemsize
    th_max = budget // max(1, 4 * d_model * w_itemsize)
    th_max = max(128, (th_max // 128) * 128)
    return _pick_hidden_chunk(hidden, th_max)


@functools.partial(jax.jit, static_argnames=("tm", "th"))
def mpt_mlp(x, w1, b1, w2, b2, *, tm=None, th=None):
    """MPTMLP forward.

    x : (..., d_model)
    w1: (d_model, H)  up_proj weight, stored transposed (in, out)
    b1: (H,)
    w2: (H, d_model)  down_proj weight, stored transposed (in, out)
    b2: (d_model,)

    tm: row tile. Default: 512 on 128-MiB-VMEM chips (v5e/v6e), 256 on
        64-MiB chips (v7x). Rounded to the dtype sublane multiple.
    th: hidden-dim chunk. Default: sized so the double-buffered (d_model, th)
        and (th, d_model) weight tiles fit ~40% of physical VMEM.
    """
    d_model = x.shape[-1]
    hidden = w1.shape[1]
    lead = x.shape[:-1]

    x2d = x.reshape(-1, d_model)
    M = x2d.shape[0]

    isz = lambda a: jnp.dtype(a.dtype).itemsize
    vmem_cap = _vmem_capacity_bytes()
    two_tc = vmem_cap <= 64 * 2**20          # v7x heuristic: 2 TCs, 64 MiB VMEM

    # --- row tile ----------------------------------------------------------
    if tm is None:
        tm = 256 if two_tc else 512
    sub = _sublane(x.dtype)
    M_sub = _round_up(M, sub)
    tm_eff = _round_up(min(tm, M_sub), sub)
    # On 2-TC chips make sure the parallel row axis has >= 2 programs when M
    # is big enough, so the second TensorCore does not idle.
    if two_tc and M_sub >= 2 * sub and M_sub // tm_eff < 2:
        tm_eff = _round_up(_cdiv(M_sub, 2), sub)
    M_pad = _round_up(M, tm_eff)
    if M_pad != M:
        x2d = jnp.pad(x2d, ((0, M_pad - M), (0, 0)))

    # --- hidden chunk ------------------------------------------------------
    if th is None:
        th_eff = _auto_hidden_chunk(hidden, d_model, isz(w1), vmem_cap)
    else:
        th_eff = _pick_hidden_chunk(hidden, th)

    b1_2d = b1.reshape(1, hidden)
    b2_2d = b2.reshape(1, d_model)

    # --- VMEM budget: double-buffered tiles + accumulator + GELU temps ------
    est = 2 * (tm_eff * d_model * isz(x2d)          # x tile
               + d_model * th_eff * isz(w1)         # W1 chunk
               + th_eff * isz(b1)                   # b1 chunk
               + th_eff * d_model * isz(w2)         # W2 chunk
               + d_model * isz(b2)                  # b2 (tiny, constant index)
               + tm_eff * d_model * isz(x2d))       # out tile
    est += tm_eff * d_model * 4                     # f32 accumulator scratch
    est += tm_eff * th_eff * (4 + isz(w2))          # f32 GELU temp + cast copy
    vmem_limit = int(min(max(32 * 2**20, est + 4 * 2**20),
                         vmem_cap - 8 * 2**20))

    grid = (M_pad // tm_eff, hidden // th_eff)

    # --- cost estimate for XLA scheduling around the custom call ------------
    flops = 4 * M_pad * d_model * hidden            # two matmuls, 2 flops/MAC
    transcendentals = M_pad * hidden                # erf per hidden element
    bytes_accessed = (2 * M_pad * d_model * isz(x2d)                 # x + out
                      + grid[0] * 2 * d_model * hidden * isz(w1)     # W1+W2 streams
                      + hidden * isz(b1) + d_model * isz(b2))

    out2d = pl.pallas_call(
        _mlp_kernel,
        out_shape=jax.ShapeDtypeStruct((M_pad, d_model), x.dtype),
        grid_spec=pltpu.PrefetchScalarGridSpec(
            num_scalar_prefetch=0,
            grid=grid,
            in_specs=[
                pl.BlockSpec((tm_eff, d_model), lambda i, k: (i, 0)),  # x rows
                pl.BlockSpec((d_model, th_eff), lambda i, k: (0, k)),  # W1 chunk
                pl.BlockSpec((1, th_eff), lambda i, k: (0, k)),        # b1 chunk
                pl.BlockSpec((th_eff, d_model), lambda i, k: (k, 0)),  # W2 chunk
                pl.BlockSpec((1, d_model), lambda i, k: (0, 0)),       # b2
            ],
            out_specs=pl.BlockSpec((tm_eff, d_model), lambda i, k: (i, 0)),
            scratch_shapes=[pltpu.VMEM((tm_eff, d_model), jnp.float32)],
        ),
        compiler_params=pltpu.CompilerParams(
            dimension_semantics=("parallel", "arbitrary"),
            vmem_limit_bytes=vmem_limit,
        ),
        cost_estimate=pl.CostEstimate(
            flops=int(flops),
            transcendentals=int(transcendentals),
            bytes_accessed=int(bytes_accessed),
        ),
    )(x2d, w1, b1_2d, w2, b2_2d)

    if M_pad != M:
        out2d = out2d[:M]
    return out2d.reshape(*lead, d_model)


def _reference(x, w1, b1, w2, b2):
    h = x @ w1 + b1
    h = 0.5 * h * (1.0 + lax.erf(h * _INV_SQRT2))
    return h @ w2 + b2


if __name__ == "__main__":
    # Small config: d_model=128, expansion_ratio=4 -> ffn_hidden_size=512.
    # seq=7 makes batch*seq=14 non-divisible by the row tile, exercising the
    # wrapper-side padding path; th=128 exercises the hidden-dim reduction
    # (grid k axis of length 4) and the k==0 / k==last epilogue logic.
    batch, seq, d_model, expansion_ratio = 2, 7, 128, 4
    hidden = int(d_model * expansion_ratio)

    key = jax.random.PRNGKey(0)
    kx, k1, kb1, k2, kb2 = jax.random.split(key, 5)

    x = jax.random.normal(kx, (batch, seq, d_model), dtype=jnp.float32)
    # nn.Linear weights are (out, in); stored transposed (in, out) here.
    w1 = jax.random.normal(k1, (d_model, hidden), dtype=jnp.float32) * 0.05
    b1 = jax.random.normal(kb1, (hidden,), dtype=jnp.float32) * 0.05
    w2 = jax.random.normal(k2, (hidden, d_model), dtype=jnp.float32) * 0.05
    b2 = jax.random.normal(kb2, (d_model,), dtype=jnp.float32) * 0.05

    ref = _reference(x, w1, b1, w2, b2)

    # f32 path, explicit small hidden chunk (strict check).
    out = mpt_mlp(x, w1, b1, w2, b2, th=128)
    jax.block_until_ready(out)
    assert out.shape == (batch, seq, d_model)
    assert jnp.allclose(out, ref, atol=1e-5, rtol=1e-4), float(
        jnp.max(jnp.abs(out - ref)))

    # f32 path with auto tile sizing (th=None -> full 512 chunk here).
    out_auto = mpt_mlp(x, w1, b1, w2, b2)
    jax.block_until_ready(out_auto)
    assert jnp.allclose(out_auto, ref, atol=1e-5, rtol=1e-4)

    # bf16 path (MXU-native operands, f32 accumulate/GELU; loose check).
    xb, w1b, b1b, w2b, b2b = (a.astype(jnp.bfloat16)
                              for a in (x, w1, b1, w2, b2))
    out_bf16 = mpt_mlp(xb, w1b, b1b, w2b, b2b, th=128)
    jax.block_until_ready(out_bf16)
    assert out_bf16.dtype == jnp.bfloat16
    assert jnp.allclose(out_bf16.astype(jnp.float32), ref, atol=5e-2, rtol=5e-2)

    print("KERNEL_OK")
</pallas_src>

<mosaic_0001>
module attributes {stable_mosaic.version = 11 : i64} {
  func.func @_mlp_kernel(%arg0: i32, %arg1: i32, %arg2: memref<8x128xf32, #tpu.memory_space<vmem>>, %arg3: memref<128x128xf32, #tpu.memory_space<vmem>>, %arg4: memref<1x128xf32, #tpu.memory_space<vmem>>, %arg5: memref<128x128xf32, #tpu.memory_space<vmem>>, %arg6: memref<1x128xf32, #tpu.memory_space<vmem>>, %arg7: memref<8x128xf32, #tpu.memory_space<vmem>>, %arg8: memref<8x128xf32, #tpu.memory_space<vmem>>) attributes {dimension_semantics = [#tpu.dimension_semantics<parallel>, #tpu.dimension_semantics<arbitrary>], iteration_bounds = array<i64: 2, 4>, scalar_prefetch = 0 : i64, scratch_operands = 1 : i64, tpu.core_type = #tpu.core_type<tc>, window_params = [{transform_indices = @transform_0, window_bounds = array<i64: 8, 128>}, {transform_indices = @transform_1, window_bounds = array<i64: 128, 128>}, {transform_indices = @transform_2, window_bounds = array<i64: 1, 128>}, {transform_indices = @transform_3, window_bounds = array<i64: 128, 128>}, {pipeline_mode = #tpu.pipeline_mode<synchronous>, transform_indices = @transform_4, window_bounds = array<i64: 1, 128>}, {transform_indices = @transform_5, window_bounds = array<i64: 8, 128>}]} {
    %c0_i32 = arith.constant 0 : i32
    %0 = arith.cmpi eq, %arg1, %c0_i32 : i32
    %1 = arith.extui %0 : i1 to i32
    %c0_i32_0 = arith.constant 0 : i32
    %2 = arith.cmpi ne, %1, %c0_i32_0 : i32
    scf.if %2 {
      %cst_17 = arith.constant 0.000000e+00 : f32
      %25 = vector.broadcast %cst_17 : f32 to vector<8x128xf32>
      %c0_18 = arith.constant 0 : index
      %c0_19 = arith.constant 0 : index
      %26 = vector.load %arg8[%c0_18, %c0_19] : memref<8x128xf32, #tpu.memory_space<vmem>>, vector<8x128xf32>
      tpu.vector_store %arg8[%c0_18, %c0_19], %25 {strides = array<i32>} : memref<8x128xf32, #tpu.memory_space<vmem>>, vector<8x128xf32>,
    } else {
    }
    %c0 = arith.constant 0 : index
    %c0_1 = arith.constant 0 : index
    %3 = vector.load %arg2[%c0, %c0_1] : memref<8x128xf32, #tpu.memory_space<vmem>>, vector<8x128xf32>
    %c0_2 = arith.constant 0 : index
    %c0_3 = arith.constant 0 : index
    %4 = vector.load %arg3[%c0_2, %c0_3] : memref<128x128xf32, #tpu.memory_space<vmem>>, vector<128x128xf32>
    %cst = arith.constant dense<0.000000e+00> : vector<8x128xf32>
    %5 = tpu.matmul %3, %4, %cst {dimension_numbers = #tpu.dot_dimension_numbers<[1], [0], [0], [1], [0, 0, 1, 1], [], []>} : vector<8x128xf32>, vector<128x128xf32>, vector<8x128xf32> -> vector<8x128xf32>
    %c0_4 = arith.constant 0 : index
    %c0_5 = arith.constant 0 : index
    %6 = vector.load %arg4[%c0_4, %c0_5] : memref<1x128xf32, #tpu.memory_space<vmem>>, vector<1x128xf32>
    %7 = vector.broadcast %6 : vector<1x128xf32> to vector<8x128xf32>
    %8 = arith.addf %5, %7 : vector<8x128xf32>
    %cst_6 = arith.constant 5.000000e-01 : f32
    %9 = vector.broadcast %cst_6 : f32 to vector<8x128xf32>
    %10 = arith.mulf %9, %8 : vector<8x128xf32>
    %cst_7 = arith.constant 0.707106769 : f32
    %11 = vector.broadcast %cst_7 : f32 to vector<8x128xf32>
    %12 = arith.mulf %8, %11 : vector<8x128xf32>
    %13 = math.erf %12 : vector<8x128xf32>
    %cst_8 = arith.constant 1.000000e+00 : f32
    %14 = vector.broadcast %cst_8 : f32 to vector<8x128xf32>
    %15 = arith.addf %14, %13 : vector<8x128xf32>
    %16 = arith.mulf %10, %15 : vector<8x128xf32>
    %c0_9 = arith.constant 0 : index
    %c0_10 = arith.constant 0 : index
    %17 = vector.load %arg8[%c0_9, %c0_10] : memref<8x128xf32, #tpu.memory_space<vmem>>, vector<8x128xf32>
    %c0_11 = arith.constant 0 : index
    %c0_12 = arith.constant 0 : index
    %18 = vector.load %arg5[%c0_11, %c0_12] : memref<128x128xf32, #tpu.memory_space<vmem>>, vector<128x128xf32>
    %cst_13 = arith.constant dense<0.000000e+00> : vector<8x128xf32>
    %19 = tpu.matmul %16, %18, %cst_13 {dimension_numbers = #tpu.dot_dimension_numbers<[1], [0], [0], [1], [0, 0, 1, 1], [], []>} : vector<8x128xf32>, vector<128x128xf32>, vector<8x128xf32> -> vector<8x128xf32>
    %20 = arith.addf %17, %19 : vector<8x128xf32>
    %c0_14 = arith.constant 0 : index
    %c0_15 = arith.constant 0 : index
    %21 = vector.load %arg8[%c0_14, %c0_15] : memref<8x128xf32, #tpu.memory_space<vmem>>, vector<8x128xf32>
    tpu.vector_store %arg8[%c0_14, %c0_15], %20 {strides = array<i32>} : memref<8x128xf32, #tpu.memory_space<vmem>>, vector<8x128xf32>,
    %c3_i32 = arith.constant 3 : i32
    %22 = arith.cmpi eq, %arg1, %c3_i32 : i32
    %23 = arith.extui %22 : i1 to i32
    %c0_i32_16 = arith.constant 0 : i32
    %24 = arith.cmpi ne, %23, %c0_i32_16 : i32
    scf.if %24 {
      %c0_17 = arith.constant 0 : index
      %c0_18 = arith.constant 0 : index
      %25 = vector.load %arg8[%c0_17, %c0_18] : memref<8x128xf32, #tpu.memory_space<vmem>>, vector<8x128xf32>
      %c0_19 = arith.constant 0 : index
      %c0_20 = arith.constant 0 : index
      %26 = vector.load %arg6[%c0_19, %c0_20] : memref<1x128xf32, #tpu.memory_space<vmem>>, vector<1x128xf32>
      %27 = vector.broadcast %26 : vector<1x128xf32> to vector<8x128xf32>
      %28 = arith.addf %25, %27 : vector<8x128xf32>
      %c0_21 = arith.constant 0 : index
      %c0_22 = arith.constant 0 : index
      %29 = vector.load %arg7[%c0_21, %c0_22] : memref<8x128xf32, #tpu.memory_space<vmem>>, vector<8x128xf32>
      tpu.vector_store %arg7[%c0_21, %c0_22], %28 {strides = array<i32>} : memref<8x128xf32, #tpu.memory_space<vmem>>, vector<8x128xf32>,
    } else {
    }
    return
  }
  func.func @transform_0(%arg0: i32, %arg1: i32) -> (i32, i32) {
    %c0_i32 = arith.constant 0 : i32
    %c0_i32_0 = arith.constant 0 : i32
    return %arg0, %c0_i32 : i32, i32
  }
  func.func @transform_1(%arg0: i32, %arg1: i32) -> (i32, i32) {
    %c0_i32 = arith.constant 0 : i32
    %c0_i32_0 = arith.constant 0 : i32
    return %c0_i32, %arg1 : i32, i32
  }
  func.func @transform_2(%arg0: i32, %arg1: i32) -> (i32, i32) {
    %c0_i32 = arith.constant 0 : i32
    %c0_i32_0 = arith.constant 0 : i32
    return %c0_i32, %arg1 : i32, i32
  }
  func.func @transform_3(%arg0: i32, %arg1: i32) -> (i32, i32) {
    %c0_i32 = arith.constant 0 : i32
    %c0_i32_0 = arith.constant 0 : i32
    return %arg1, %c0_i32 : i32, i32
  }
  func.func @transform_4(%arg0: i32, %arg1: i32) -> (i32, i32) {
    %c0_i32 = arith.constant 0 : i32
    %c0_i32_0 = arith.constant 0 : i32
    %c0_i32_1 = arith.constant 0 : i32
    return %c0_i32, %c0_i32_0 : i32, i32
  }
  func.func @transform_5(%arg0: i32, %arg1: i32) -> (i32, i32) {
    %c0_i32 = arith.constant 0 : i32
    %c0_i32_0 = arith.constant 0 : i32
    return %arg0, %c0_i32 : i32, i32
  }
}

</mosaic_0001>

<bundles_post_ra>
// kernel: mpt_mlp.1
= control target key start
LH: loop header
LB: loop body
LE: loop exit
PB: predicated region body
PF: predicated region fallthrough
CT: control target
= control target key end

     0   :  { %s1363_s0 = inlined_call_operand.vmem [shape: f32[16,128], index: 0, kind: input, shape index: {}]   ;;  %s1364_s1 = inlined_call_operand.hbm [shape: f32[128,512], index: 1, kind: input, shape index: {}]   ;;  %s1365_s2 = inlined_call_operand.vmem [shape: f32[1,512], index: 2, kind: input, shape index: {}]   ;;  %s1366_s3 = inlined_call_operand.hbm [shape: f32[512,128], index: 3, kind: input, shape index: {}]   ;;  %s1367_s4 = inlined_call_operand.vmem [shape: f32[1,128], index: 4, kind: input, shape index: {}]   ;;  %s1368_s5 = inlined_call_operand.vmem [shape: f32[16,128], index: 5, kind: output, shape index: {}]  }
   0x1   :  { %1370 = sst [smem:[#allocation10_spill]] %s1364_s1 }
   0x2   :  { %10 = vsyncpa [#allocation4], 0 }
   0x3   :  { %12 = vsyncpa [#allocation4 + $0x1], 0 }
   0x4   :  { %13 = vsyncpa [#allocation6], 0 }
   0x5   :  { %15 = vsyncpa [#allocation6 + $0x1], 0  ;;  %s1082_s18 = smov 0   ;;  %s1084_s19 = smov 0  }
   0x6   :  { %s1086_s20 = smov 0   ;;  %s1088_s21 = smov 0  }
   0x7   :  { %s1090_s22 = smov 0   ;;  %s1092_s23 = smov 0  }
   0x8   :  { %s1094_s24 = smov 0   ;;  %s1096_s25 = smov 0  }
   0x9 LB: > { %s653_s26 = sadd.s32 4294967295, %s1041_s25   ;;  %s30_s27 = sadd.s32 1, %s1033_s23  ;;  %s1041_s25 = sphi %s1096_s25, %s21_s25   ;;  %s1037_s24 = sphi %s1094_s24, %s1386_s24   ;;  %s1033_s23 = sphi %s1092_s23, %s1385_s23   ;;  %s1029_s22 = sphi %s1090_s22, %s1384_s22   ;;  %s1025_s21 = sphi %s1088_s21, %s1383_s21   ;;  %s1021_s20 = sphi %s1086_s20, %s1382_s20   ;;  %s1017_s19 = sphi %s1084_s19, %s1381_s19   ;;  %s1013_s18 = sphi %s1082_s18, %s1380_s18  }
   0xa   : > { %p31_p0 = scmp.ge.s32.totalorder %s30_s27, 4  ;;  %s33_s28 = sadd.s32 1, %s1037_s24 }
   0xb   : > { %s66_s29 = sadd.s32 1, %s1021_s20  ;;  %p73_p1 = scmp.ne.s32.totalorder %s1021_s20, %s1017_s19 }
   0xc   : > { %s1388_s27 = smov (%p31_p0, %s30_s27), 0  ;;  %s1390_s28 = smov (!%p31_p0, %s33_s28), %s1037_s24 }
   0xd   : > { %s63_s30 = ssub.s32 %s1033_s23, %s1388_s27  ;;  %p74_p2 = scmp.eq.s32.totalorder %s1041_s25, 0 }
   0xe   : > { %p35_p3 = scmp.ge.s32.totalorder %s1390_s28, 2  ;;  %p64_p4 = scmp.eq.s32.totalorder %s63_s30, 0 }
   0xf   : > { %p1132_p5 = por %p74_p2, %p73_p1  ;;  %p79_p6 = scmp.ne.s32.totalorder %s1017_s19, %s1013_s18 }
  0x10   : > { %s1392_s28 = smov (%p35_p3, %s1390_s28), 0  ;;  %p80_p7 = scmp.eq.s32.totalorder %s653_s26, 0 }
  0x11   : > { %1372 = sst [smem:[#allocation9_spill]] %s1392_s28  ;;  %p837_p8 = scmp.lt.s32.totalorder %s1041_s25, 8 }
  0x12   : > { %s1140_s7 = scalar_select %p64_p4, %s1021_s20, %s66_s29  }
  0x13   : > { %s1144_s8 = sand.u32 1, %s1021_s20   ;;  %p1146_p9 = por %p80_p7, %p79_p6 }
  0x14   : > { %s657_s10 = sshll.u32 %s1144_s8, 7  ;;  %s658_s11 = sshll.u32 %s1033_s23, 7 }
  0x15   : > { %s1373_s9 = scalar_select %p1146_p9, 1, 0 }
  0x16   : > { %s1374_s1 = sld [smem:[#allocation10_spill]]  ;;  %s216_s15 = scalar_lea.vmem [#allocation3], %s657_s10 }
  0x17   : > { %s222_s16 = sshll.u32 %s216_s15, 4  ;;  %p1161_p10 = pnand %p837_p8, %p1132_p5  ;;  %s1165_s16 = int_to_ptr.vmem [resolvable:$true] %s222_s16 }
  0x18   : > { %s213_s18 = scalar_lea.sflag [#allocation4], %s1144_s8 }
  0x19   : > { %p913_p13 = pneg %p1161_p10 }
  0x1c   : > { %s1155_s14 = scalar_lea.hbm %s1374_s1, %s658_s11  ;;  %s916_s6 = scalar_lea.hbm %s1374_s1, 8192 }
  0x1d   : > { %s911_s26 = scalar_lea.hbm %s1155_s14, 2048  ;;  %p917_p2 = scmp.lt.u32.totalorder %s1155_s14, %s1374_s1 }
  0x1e   : > { %p912_p12 = scmp.ne.s32.totalorder %s1155_s14, %s911_s26  ;;  %p918_p3 = scmp.lt.u32.totalorder %s916_s6, %s911_s26 }
  0x1f   : > { %p920_p5 = scmp.lt.u32.totalorder %s911_s26, %s1155_s14 }
  0x20   : > { %p914_p0 = pnand %p913_p13, %p912_p12  ;;  %p919_p4 = por %p918_p3, %p917_p2 }
  0x22   : > { %p915_p1 = pneg %p914_p0  ;;  %p921_p6 = por %p920_p5, %p919_p4 }
  0x24   : > { %p922_p7 = pnand %p921_p6, %p915_p1 }
  0x26   : > { %925 = shalt.err (!%p922_p7)
}
  0x27   : > { %s926_s13 = scalar_lea.vmem %s1165_s16, 2048  ;;  %s1043_s15 = smov [#allocation3]  }
  0x28   : > { %p927_p8 = scmp.ne.s32.totalorder %s1165_s16, %s926_s13  ;;  %s931_s29 = sshll.u32 %s1043_s15, 4  ;;  %s932_s29 = int_to_ptr.vmem [resolvable:$false] %s931_s29 }
  0x29   : > { %s933_s30 = scalar_lea.vmem %s932_s29, 4096  ;;  %p934_p11 = scmp.lt.s32.totalorder %s1165_s16, %s932_s29 }
  0x2a   : > { %p929_p12 = pnand %p927_p8, %p913_p13  ;;  %p935_p2 = scmp.lt.s32.totalorder %s933_s30, %s926_s13 }
  0x2c   : > { %p930_p0 = pneg %p929_p12  ;;  %p936_p3 = por %p935_p2, %p934_p11 }
  0x2e   : > { %p937_p4 = pnand %p936_p3, %p930_p0 }
  0x30   : > { %940 = shalt.err (!%p937_p4)
}
  0x31   : > { %s1044_s26 = smov 512   ;;  %s1045_s6 = smov 128  }
  0x32   : > { %s1046_s11 = smov 8   ;;  %p257_p11 = scmp.lt.s32.totalorder %s1041_s25, 9 }
  0x33   : > { %833 = dma.hbm_to_vmem [thread:$0]  (!%p1161_p10), %s1155_s14, 2048, %s1165_s16, %s213_s18, %s1044_s26, %s1045_s6, %s1046_s11  }
  0x34   : > { %s673_s12 = sshll.u32 %s1033_s23, 11  ;;  %p1376_p1 = scmp.ge.s32.totalorder %s1041_s25, 1 }
  0x35   : > { %s1209_s30 = scalar_lea.hbm %s1366_s3, %s673_s12  ;;  %s242_s1 = scalar_lea.vmem [#allocation5], %s657_s10 }
  0x36   : > { %p1202_p5 = pnand %p1376_p1, %p257_p11  ;;  %s249_s28 = sshll.u32 %s242_s1, 4  ;;  %s1213_s28 = int_to_ptr.vmem [resolvable:$true] %s249_s28 }
  0x37   : > { %s239_s14 = scalar_lea.sflag [#allocation6], %s1144_s8  ;;  %s941_s16 = scalar_lea.hbm %s1209_s30, 2048 }
  0x38   : > { %p942_p6 = scmp.ne.s32.totalorder %s1209_s30, %s941_s16  ;;  %s946_s12 = scalar_lea.hbm %s1366_s3, 8192 }
  0x39   : > { %p947_p12 = scmp.lt.u32.totalorder %s1209_s30, %s1366_s3  ;;  %p948_p0 = scmp.lt.u32.totalorder %s946_s12, %s941_s16 }
  0x3a   : > { %p944_p7 = pnand %p942_p6, %p913_p13  ;;  %p950_p3 = scmp.lt.u32.totalorder %s941_s16, %s1209_s30 }
  0x3b   : > { %p949_p2 = por %p948_p0, %p947_p12 }
  0x3c   : > { %p945_p8 = pneg %p944_p7 }
  0x3d   : > { %p951_p4 = por %p950_p3, %p949_p2 }
  0x3f   : > { %p952_p11 = pnand %p951_p4, %p945_p8 }
  0x41   : > { %955 = shalt.err (!%p952_p11)
}
  0x42   : > { %s956_s1 = scalar_lea.vmem %s1213_s28, 2048  ;;  %s1047_s10 = smov [#allocation5]  }
  0x43   : > { %p957_p1 = scmp.ne.s32.totalorder %s1213_s28, %s956_s1  ;;  %s961_s18 = sshll.u32 %s1047_s10, 4  ;;  %s962_s18 = int_to_ptr.vmem [resolvable:$false] %s961_s18 }
  0x44   : > { %s963_s26 = scalar_lea.vmem %s962_s18, 4096  ;;  %p964_p9 = scmp.lt.s32.totalorder %s1213_s28, %s962_s18 }
  0x45   : > { %p959_p6 = pnand %p957_p1, %p913_p13  ;;  %p965_p12 = scmp.lt.s32.totalorder %s963_s26, %s956_s1 }
  0x47   : > { %p960_p7 = pneg %p959_p6  ;;  %p966_p0 = por %p965_p12, %p964_p9 }
  0x49   : > { %p967_p2 = pnand %p966_p0, %p960_p7 }
  0x4b   : > { %970 = shalt.err (!%p967_p2)
}
  0x4c   : > { %836 = dma.hbm_to_vmem [thread:$0]  (!%p1161_p10), %s1209_s30, 2048, %s1213_s28, %s239_s14, %s1045_s6, %s1045_s6, %s1046_s11  }
  0x4d   : > { %261 = sbr.rel (%p1202_p5) target bundleno = 588 (0x24c), region = 40  ;;  %s263_s16 = sand.u32 (!%p1202_p5), 1, %s1017_s19  }
  0x4e   : > { %s663_s12 = sshll.u32 (!%p1202_p5), %s263_s16, 7  ;;  %s264_s15 = scalar_lea.sflag (!%p1202_p5), [#allocation4], %s263_s16 }
  0x4f   : > { %s1247_s29 = scalar_lea.vmem (!%p1202_p5), [#allocation3], %s663_s12  ;;  %p1378_p9 = scmp.ne.s32.totalorder (!%p1202_p5), %s1373_s9, 0 }
  0x54   : > { %1004 = dma.done.wait (%p1378_p9), %s264_s15, 2048  }
  0x55   : > { %1006 = vsyncadd (%p1378_p9), %s264_s15, 4294965248  ;;  %s273_s8 = scalar_lea.sflag [#allocation6], %s263_s16  ;;  %s1253_s17 = scalar_lea.vmem [#allocation5], %s663_s12 }
  0x56   : > { %1008 = dma.done.wait (%p1378_p9), %s273_s8, 2048  }
  0x57   : > { %1010 = vsyncadd (%p1378_p9), %s273_s8, 4294965248  ;;  %p314_p10 = scmp.lt.s32.totalorder %s1029_s22, 1  ;;  %p318_p13 = scmp.lt.s32.totalorder %s1025_s21, 3 }
  0x58   : > { %p667_p5 = scmp.ne.s32.totalorder %s1025_s21, 0 }
  0x59   : > { %s1394_s22 = smov (!%p314_p10, %s1029_s22), 1  ;;  %v1048_v0 = vmov (!%p667_p5), 0.0  }
  0x5a   : > { %s1263_s28 = scalar_select %p318_p13, %s1025_s21, 3 }
  0x5b   : > { %s665_s6 = sshll.u32 %s1394_s22, 3  ;;  %329 = sbr.rel (%p667_p5) target bundleno = 98 (0x62), region = 52  ;;  %330 = vst [vmem:[#allocation2] sm:$0xff] (!%p667_p5), %v1048_v0 }
  0x5c   : > { %s1268_s30 = scalar_lea.vmem %s1363_s0, %s665_s6  ;;  %s320_s9 = scalar_lea.vmem %s1365_s2, %s1263_s28 }
  0x5d   : > { %s1277_s26 = scalar_lea.vmem %s1368_s5, %s665_s6 }
  0x62 PF: > { %v332_v1 = vld [vmem:[%s1247_s29] sm:$0xff]  ;;  %v333_v2 = vld [vmem:[%s1247_s29 + $0x8] sm:$0xff]  ;;  %v334_v3 = vld [vmem:[%s1247_s29 + $0x10] sm:$0xff]  ;;  %v1049_v4 = vmov 0.0|0.0   ;;  %vm1050_vm0 = vmmov 0   ;;  %v1051_v7 = vmov 0.0  }
  0x63   : > { %778 = vmatprep.subr.bf16.mxu0 %v1049_v4  ;;  %v779_v5 = vpack.c.bf16 %v333_v2, %v332_v1  ;;  %v335_v6 = vld [vmem:[%s1247_s29 + $0x18] sm:$0xff]  ;;  %740 = vmatprep.mubr.msk.f32.mxu0 %vm1050_vm0, %v1051_v7  ;;  %v336_v9 = vld [vmem:[%s1247_s29 + $0x20] sm:$0xff]  ;;  %v337_v10 = vld [vmem:[%s1247_s29 + $0x28] sm:$0xff]  ;;  %p669_p8 = scmp.ne.s32.totalorder %s1025_s21, 3 }
  0x64   : > { %802 = vmatprep.subr.bf16.mxu1 %v1049_v4  ;;  %775 = vmatprep.mubr.msk.f32.mxu1 %vm1050_vm0, %v1051_v7  ;;  %v782_v8 = vpack.c.bf16 %v335_v6, %v334_v3  ;;  %v431_v11 = vld [vmem:[%s1253_s17] sm:$0xff]  ;;  %v432_v12 = vld [vmem:[%s1253_s17 + $0x8] sm:$0xff]  ;;  %v433_v13 = vld [vmem:[%s1253_s17 + $0x10] sm:$0xff]  ;;  %v785_v15 = vpack.c.bf16 %v337_v10, %v336_v9 }
  0x65   : > { %780 = vmatpush3.bf16.msra.mxu0 %v779_v5  ;;  %v434_v14 = vld [vmem:[%s1253_s17 + $0x18] sm:$0xff]  ;;  %v803_v16 = vpack.c.bf16 %v432_v12, %v431_v11  ;;  %v338_v17 = vld [vmem:[%s1247_s29 + $0x30] sm:$0xff]  ;;  %v435_v20 = vld [vmem:[%s1253_s17 + $0x20] sm:$0xff] }
  0x66   : > { %781 = vmatprep.subr.bf16.mxu0 %v1049_v4  ;;  %v339_v18 = vld [vmem:[%s1247_s29 + $0x38] sm:$0xff]  ;;  %v806_v19 = vpack.c.bf16 %v434_v14, %v433_v13  ;;  %v436_v21 = vld [vmem:[%s1253_s17 + $0x28] sm:$0xff]  ;;  %v340_v23 = vld [vmem:[%s1247_s29 + $0x40] sm:$0xff] }
  0x67   : > { %804 = vmatpush3.bf16.msra.mxu1 %v803_v16  ;;  %v788_v22 = vpack.c.bf16 %v339_v18, %v338_v17  ;;  %v341_v24 = vld [vmem:[%s1247_s29 + $0x48] sm:$0xff]  ;;  %v809_v25 = vpack.c.bf16 %v436_v21, %v435_v20  ;;  %v342_v27 = vld [vmem:[%s1247_s29 + $0x50] sm:$0xff]  ;;  %v343_v28 = vld [vmem:[%s1247_s29 + $0x58] sm:$0xff] }
  0x68   : > { %805 = vmatprep.subr.bf16.mxu1 %v1049_v4  ;;  %v791_v26 = vpack.c.bf16 %v341_v24, %v340_v23  ;;  %v794_v29 = vpack.c.bf16 %v343_v28, %v342_v27  ;;  %v344_v30 = vld [vmem:[%s1247_s29 + $0x60] sm:$0xff]  ;;  %v345_v31 = vld [vmem:[%s1247_s29 + $0x68] sm:$0xff]  ;;  %v346_v33 = vld [vmem:[%s1247_s29 + $0x70] sm:$0xff] }
  0x69   : > { %783 = vmatpush3.bf16.msra.mxu0 %v782_v8  ;;  %v797_v32 = vpack.c.bf16 %v345_v31, %v344_v30  ;;  %v347_v34 = vld [vmem:[%s1247_s29 + $0x78] sm:$0xff]  ;;  %v437_v37 = vld [vmem:[%s1253_s17 + $0x30] sm:$0xff]  ;;  %v439_v40 = vld [vmem:[%s1253_s17 + $0x40] sm:$0xff] }
  0x6a   : > { %784 = vmatprep.subr.bf16.mxu0 %v1049_v4  ;;  %v800_v35 = vpack.c.bf16 %v347_v34, %v346_v33  ;;  %v331_v36 = vld [vmem:[%s1268_s30] sm:$0xff]  ;;  %v440_v41 = vld [vmem:[%s1253_s17 + $0x48] sm:$0xff]  ;;  %v441_v43 = vld [vmem:[%s1253_s17 + $0x50] sm:$0xff] }
  0x6b   : > { %807 = vmatpush3.bf16.msra.mxu1 %v806_v19  ;;  %v438_v38 = vld [vmem:[%s1253_s17 + $0x38] sm:$0xff]  ;;  %v815_v42 = vpack.c.bf16 %v440_v41, %v439_v40  ;;  %v443_v46 = vld [vmem:[%s1253_s17 + $0x60] sm:$0xff]  ;;  %v444_v47 = vld [vmem:[%s1253_s17 + $0x68] sm:$0xff] }
  0x6c   : > { %808 = vmatprep.subr.bf16.mxu1 %v1049_v4  ;;  %v812_v39 = vpack.c.bf16 %v438_v38, %v437_v37  ;;  %v442_v44 = vld [vmem:[%s1253_s17 + $0x58] sm:$0xff]  ;;  %v821_v48 = vpack.c.bf16 %v444_v47, %v443_v46  ;;  %v445_v49 = vld [vmem:[%s1253_s17 + $0x70] sm:$0xff] }
  0x6d   : > { %786 = vmatpush3.bf16.msra.mxu0 %v785_v15  ;;  %v818_v45 = vpack.c.bf16 %v442_v44, %v441_v43  ;;  %v446_v50 = vld [vmem:[%s1253_s17 + $0x78] sm:$0xff] }
  0x6e   : > { %787 = vmatprep.subr.bf16.mxu0 %v1049_v4  ;;  %v824_v51 = vpack.c.bf16 %v446_v50, %v445_v49  ;;  %v668_v52 = vld [vmem:[%s320_s9] ss:$0 sm:$0xff] }
  0x6f   : > { %810 = vmatpush3.bf16.msra.mxu1 %v809_v25  ;;  %v430_v61 = vld [vmem:[#allocation2] sm:$0xff] }
  0x70   : > { %811 = vmatprep.subr.bf16.mxu1 %v1049_v4  ;;  %v670_v2 = vld [vmem:[%s1367_s4] ss:$0 sm:$0xff] (!%p669_p8) }
  0x71   : > { %789 = vmatpush3.bf16.msra.mxu0 %v788_v22 }
  0x72   : > { %790 = vmatprep.subr.bf16.mxu0 %v1049_v4 }
  0x73   : > { %813 = vmatpush3.bf16.msra.mxu1 %v812_v39 }
  0x74   : > { %814 = vmatprep.subr.bf16.mxu1 %v1049_v4 }
  0x75   : > { %792 = vmatpush3.bf16.msra.mxu0 %v791_v26 }
  0x76   : > { %793 = vmatprep.subr.bf16.mxu0 %v1049_v4 }
  0x77   : > { %816 = vmatpush3.bf16.msra.mxu1 %v815_v42 }
  0x78   : > { %817 = vmatprep.subr.bf16.mxu1 %v1049_v4 }
  0x79   : > { %795 = vmatpush3.bf16.msra.mxu0 %v794_v29 }
  0x7a   : > { %796 = vmatprep.subr.bf16.mxu0 %v1049_v4 }
  0x7b   : > { %819 = vmatpush3.bf16.msra.mxu1 %v818_v45 }
  0x7c   : > { %820 = vmatprep.subr.bf16.mxu1 %v1049_v4 }
  0x7d   : > { %798 = vmatpush3.bf16.msra.mxu0 %v797_v32 }
  0x7e   : > { %799 = vmatprep.subr.bf16.mxu0 %v1049_v4 }
  0x7f   : > { %822 = vmatpush3.bf16.msra.mxu1 %v821_v48 }
  0x80   : > { %823 = vmatprep.subr.bf16.mxu1 %v1049_v4 }
  0x81   : > { %801 = vmatpush3.bf16.msra.mxu0 %v800_v35 }
  0x83   : > { %825 = vmatpush3.bf16.msra.mxu1 %v824_v51 }
  0x84   : > { %741 = vmatmul.mubr.f32.vlgmr.msra.gmra.mrb[0].mxu0 %v331_v36 }
 0x157   : > { %v421_v53 = vpop.f32.mrb[0].mxu0 }
 0x158   : > { %v422_v54 = vadd.f32 %v668_v52, %v421_v53  ;;  %v742_v55 = vpop.f32.mrb[1].mxu0 }
 0x15a   : > { %v426_v56 = vmul.f32 0.70710677, %v422_v54  ;;  %v425_v58 = vmul.f32 0.5, %v422_v54 }
 0x15c   : > { %909 = verf.f32 %v426_v56 }
 0x166   : > { %v910_v57 = vpop.eup %909 }
 0x167   : > { %v428_v59 = vadd.f32 1.0, %v910_v57 }
 0x169   : > { %v429_v60 = vmul.f32 %v428_v59, %v425_v58 }
 0x16b   : > { %776 = vmatmul.mubr.f32.vlgmr.msra.gmra.mrb[0].mxu1 %v429_v60 }
 0x23b   : > { %522 = sbr.rel (%p669_p8) target bundleno = 588 (0x24c), region = 56 }
 0x23e   : > { %v513_v62 = vpop.f32.mrb[0].mxu1 }
 0x23f   : > { %v517_v63 = vadd.f32 %v513_v62, %v430_v61  ;;  %v777_v0 = vpop.f32.mrb[1].mxu1 }
 0x241   : > { %518 = vst [vmem:[#allocation2] sm:$0xff] %v517_v63 }
 0x248   : > { %v523_v1 = vld [vmem:[#allocation2] sm:$0xff] }
 0x249   : > { %v531_v3 = vadd.f32 %v670_v2, %v523_v1 }
 0x24b   : > { %532 = vst [vmem:[%s1277_s26] sm:$0xff] %v531_v3 }
 0x24c PF: > { %s21_s25 = sadd.s32 1, %s1041_s25   ;;  %s1379_s29 = sld [smem:[#allocation9_spill]] }
 0x24d   : > { %p18_p3 = scmp.ge.s32.totalorder %s21_s25, 10   ;;  %s1380_s18 = smov %s1017_s19 }
 0x24e   : > { %s1381_s19 = smov %s1021_s20  ;;  %s1382_s20 = smov %s1140_s7 }
 0x24f   : > { %s1383_s21 = smov %s1033_s23  ;;  %s1384_s22 = smov %s1037_s24 }
 0x250   : > { %s1385_s23 = smov %s1388_s27  ;;  %20 = sbr.rel (!%p18_p3) target bundleno = 9 (0x9), region = 107 }
 0x252   : > { %s1386_s24 = smov %s1379_s29 }
 0x257   :  { %552 = vsyncpa [#allocation4], 1 }
 0x258   :  { %554 = vsyncpa [#allocation4 + $0x1], 1 }
 0x259   :  { %555 = vsyncpa [#allocation6], 1 }
 0x25a   :  { %557 = vsyncpa [#allocation6 + $0x1], 1 }

</bundles_post_ra>
